<compile_context>
chip_gen: v7x
topology: tpu7x:2x2x1
jax: 0.10.0
libtpu: 0.0.40
codegen_flags: <defaults>
</compile_context>

<pallas_src>
import jax
import jax.numpy as jnp
import numpy as np
from jax.experimental import pallas as pl
from jax.experimental.pallas import tpu as pltpu

LN_EPS = 1e-5


def _fpn_level_kernel(x_ref, w1t_ref, w2t_ref, lnw_ref, lnb_ref, o_ref):
    """Fused se_block + channel LayerNorm for one (BB, C, T) tile."""
    x = x_ref[...].astype(jnp.float32)                    # (BB, C, T)

    # --- se_block gate -----------------------------------------------------
    # AdaptiveAvgPool1d(1) after the transpose == mean over C per time step.
    y = jnp.mean(x, axis=1)                               # (BB, T)
    w1t = w1t_ref[...].astype(jnp.float32)                # (T, H)
    w2t = w2t_ref[...].astype(jnp.float32)                # (H, T)
    h = jnp.maximum(
        jnp.dot(y, w1t, preferred_element_type=jnp.float32), 0.0)    # (BB, H)
    z = jax.nn.sigmoid(
        jnp.dot(h, w2t, preferred_element_type=jnp.float32))         # (BB, T)

    # --- channel LayerNorm with the SE scale folded in ----------------------
    # LN_C(x*z) with z broadcast over C:
    #   mean_C(x*z) = z*y,  var_C(x*z) = z^2 * var_C(x)
    r = x - y[:, None, :]                                 # (BB, C, T)
    var = jnp.mean(r * r, axis=1)                         # (BB, T)
    scale = z * jax.lax.rsqrt(z * z * var + LN_EPS)       # (BB, T)
    out = r * scale[:, None, :]
    out = out * lnw_ref[...][None] + lnb_ref[...][None]   # affine: (1,C,1) bcast
    o_ref[...] = out.astype(o_ref.dtype)


# Flipped to False at runtime if this Pallas version does not accept a
# per-operand pipeline_mode on the main grid.
_WEIGHT_SINGLE_BUFFER = [True]


def _level_call(x, w1t, w2t, lnw, lnb, block_b, single_buffer,
                vmem_limit_bytes):
    B, C, T = x.shape
    H = w1t.shape[1]

    if single_buffer:
        # Grid-invariant operands: don't waste VMEM on double buffering.
        wkw = dict(pipeline_mode=pl.Buffered(1))
    else:
        wkw = {}

    return pl.pallas_call(
        _fpn_level_kernel,
        out_shape=jax.ShapeDtypeStruct((B, C, T), x.dtype),
        grid_spec=pltpu.PrefetchScalarGridSpec(
            num_scalar_prefetch=0,
            grid=(B // block_b,),
            in_specs=[
                pl.BlockSpec((block_b, C, T), lambda b: (b, 0, 0)),       # x
                pl.BlockSpec((T, H), lambda b: (0, 0), **wkw),            # W1^T
                pl.BlockSpec((H, T), lambda b: (0, 0), **wkw),            # W2^T
                pl.BlockSpec((C, 1), lambda b: (0, 0), **wkw),            # ln w
                pl.BlockSpec((C, 1), lambda b: (0, 0), **wkw),            # ln b
            ],
            out_specs=pl.BlockSpec((block_b, C, T), lambda b: (b, 0, 0)),
        ),
        compiler_params=pltpu.CompilerParams(
            dimension_semantics=("parallel",),
            vmem_limit_bytes=vmem_limit_bytes,
        ),
    )(x, w1t, w2t, lnw, lnb)


def fpn_identity_level(x, w1t, w2t, lnw, lnb, *, block_b=None,
                       vmem_limit_bytes=48 * 1024 * 1024):
    """One FPN level.

    x: (B, C, T); w1t: (T, H) (= W1^T, bf16 ok); w2t: (H, T) (= W2^T, bf16 ok);
    lnw / lnb: (C, 1).
    """
    B, C, T = x.shape
    H = w1t.shape[1]
    assert w1t.shape == (T, H) and w2t.shape == (H, T)
    assert lnw.shape == (C, 1) and lnb.shape == (C, 1)

    if block_b is None:
        # Batch blocking amortizes per-step grid overhead and gives the SE
        # matmuls M > 1.  Keep at least 2 grid steps so ("parallel",) can be
        # split across TensorCores (v7x megacore) and the per-step tile stays
        # VMEM-friendly on v7x (64 MiB physical VMEM).  On v5e/v6e with larger
        # batches, block_b=2..4 can be passed explicitly.
        block_b = 2 if (B % 2 == 0 and B > 2) else 1
    assert B % block_b == 0, "batch must be divisible by block_b"

    if _WEIGHT_SINGLE_BUFFER[0]:
        try:
            return _level_call(x, w1t, w2t, lnw, lnb, block_b, True,
                               vmem_limit_bytes)
        except Exception:
            # TODO(synk): per-operand pipeline_mode not supported by this
            # Pallas build; fall back to default double buffering.
            _WEIGHT_SINGLE_BUFFER[0] = False
    return _level_call(x, w1t, w2t, lnw, lnb, block_b, False, vmem_limit_bytes)


class FPNIdentityPallas:
    """JAX/Pallas port of FPNIdentity (with_ln=True)."""

    def __init__(self, in_channels, out_channel, start_level=0, end_level=-1,
                 time=2304, ratio=8, key=jax.random.PRNGKey(0)):
        self.in_channels = tuple(in_channels)
        self.out_channel = out_channel
        self.start_level = start_level
        self.end_level = len(in_channels) if end_level == -1 else end_level
        assert self.end_level <= len(in_channels)
        assert 0 <= self.start_level < self.end_level

        self.params = []
        t = time
        for i in range(self.start_level, self.end_level):
            assert self.in_channels[i] == self.out_channel
            h = t // ratio
            key, k1, k2 = jax.random.split(key, 3)
            # deterministic synthetic weights (shapes match nn.Linear, no bias)
            w1 = (jax.random.normal(k1, (h, t), jnp.float32) *
                  (1.0 / np.sqrt(t)))
            w2 = (jax.random.normal(k2, (t, h), jnp.float32) *
                  (1.0 / np.sqrt(h)))
            # Stored pre-transposed (no per-call transpose ops) and in bf16
            # (halves weight HBM traffic / VMEM footprint; SE gate is tiny).
            w1t = jnp.transpose(w1).astype(jnp.bfloat16)      # (t, h)
            w2t = jnp.transpose(w2).astype(jnp.bfloat16)      # (h, t)
            lnw = jnp.ones((out_channel, 1), jnp.float32)     # PyTorch LN init
            lnb = jnp.zeros((out_channel, 1), jnp.float32)
            self.params.append((w1t, w2t, lnw, lnb, t))
            t //= 2

    def __call__(self, inputs, fpn_masks):
        assert len(inputs) == len(self.in_channels)
        assert len(fpn_masks) == len(self.in_channels)
        fpn_feats, new_masks = (), ()
        for i, (w1t, w2t, ln_w, ln_b, t) in enumerate(self.params):
            x = inputs[i + self.start_level]
            assert x.shape[2] == t, "this port assumes T == time per level"
            y = fpn_identity_level(x, w1t, w2t, ln_w, ln_b)
            fpn_feats += (y,)
            new_masks += (fpn_masks[i + self.start_level],)
        return fpn_feats, new_masks


def _ref_level(x, w1t, w2t, ln_w, ln_b):
    """Pure-JAX reference of one level (se_block + channel LayerNorm)."""
    x = x.astype(jnp.float32)
    w1t = w1t.astype(jnp.float32)
    w2t = w2t.astype(jnp.float32)
    y = jnp.mean(x, axis=1)                               # (B, T)
    h = jnp.maximum(y @ w1t, 0.0)                         # (B, H)
    z = jax.nn.sigmoid(h @ w2t)                           # (B, T)
    xs = x * z[:, None, :]
    mu = jnp.mean(xs, axis=1, keepdims=True)
    res = xs - mu
    var = jnp.mean(res * res, axis=1, keepdims=True)
    out = res / jnp.sqrt(var + LN_EPS)
    return out * ln_w.reshape(1, -1, 1) + ln_b.reshape(1, -1, 1)


if __name__ == "__main__":
    # Small, module-consistent shapes: 2 pyramid levels, per-level time halves.
    B, C = 2, 16
    time0, ratio = 64, 8
    in_channels = (C, C)

    key = jax.random.PRNGKey(0)
    k_x0, k_x1, k_params = jax.random.split(key, 3)
    inputs = (
        jax.random.normal(k_x0, (B, C, time0), jnp.float32),       # level 0
        jax.random.normal(k_x1, (B, C, time0 // 2), jnp.float32),  # level 1
    )
    fpn_masks = (
        jnp.ones((B, 1, time0), jnp.bool_),
        jnp.ones((B, 1, time0 // 2), jnp.bool_),
    )

    neck = FPNIdentityPallas(in_channels, C, time=time0, ratio=ratio,
                             key=k_params)
    feats, masks = neck(inputs, fpn_masks)
    feats = jax.block_until_ready(feats)

    # correctness check against the pure-JAX reference
    for lvl, (w1t, w2t, ln_w, ln_b, _) in enumerate(neck.params):
        ref = _ref_level(inputs[lvl], w1t, w2t, ln_w, ln_b)
        np.testing.assert_allclose(np.asarray(feats[lvl]), np.asarray(ref),
                                   rtol=1e-4, atol=1e-4)
        assert feats[lvl].shape == inputs[lvl].shape
        assert masks[lvl].shape == fpn_masks[lvl].shape

    # also exercise the batch-blocked (BB > 1) code path explicitly
    w1t, w2t, ln_w, ln_b, _ = neck.params[0]
    y_bb = jax.block_until_ready(
        fpn_identity_level(inputs[0], w1t, w2t, ln_w, ln_b, block_b=2))
    np.testing.assert_allclose(
        np.asarray(y_bb), np.asarray(_ref_level(inputs[0], w1t, w2t, ln_w, ln_b)),
        rtol=1e-4, atol=1e-4)

    print("KERNEL_OK")
</pallas_src>

<mosaic_0001>
module attributes {stable_mosaic.version = 11 : i64} {
  func.func @_fpn_level_kernel(%arg0: i32, %arg1: memref<1x16x64xf32, #tpu.memory_space<vmem>>, %arg2: memref<64x8xbf16, #tpu.memory_space<vmem>>, %arg3: memref<8x64xbf16, #tpu.memory_space<vmem>>, %arg4: memref<16x1xf32, #tpu.memory_space<vmem>>, %arg5: memref<16x1xf32, #tpu.memory_space<vmem>>, %arg6: memref<1x16x64xf32, #tpu.memory_space<vmem>>) attributes {dimension_semantics = [#tpu.dimension_semantics<parallel>], iteration_bounds = array<i64: 2>, scalar_prefetch = 0 : i64, scratch_operands = 0 : i64, tpu.core_type = #tpu.core_type<tc>, window_params = [{transform_indices = @transform_0, window_bounds = array<i64: 1, 16, 64>}, {pipeline_mode = #tpu.pipeline_mode<synchronous>, transform_indices = @transform_1, window_bounds = array<i64: 64, 8>}, {pipeline_mode = #tpu.pipeline_mode<synchronous>, transform_indices = @transform_2, window_bounds = array<i64: 8, 64>}, {pipeline_mode = #tpu.pipeline_mode<synchronous>, transform_indices = @transform_3, window_bounds = array<i64: 16, 1>}, {pipeline_mode = #tpu.pipeline_mode<synchronous>, transform_indices = @transform_4, window_bounds = array<i64: 16, 1>}, {transform_indices = @transform_5, window_bounds = array<i64: 1, 16, 64>}]} {
    %c0 = arith.constant 0 : index
    %c0_0 = arith.constant 0 : index
    %c0_1 = arith.constant 0 : index
    %0 = vector.load %arg1[%c0, %c0_0, %c0_1] : memref<1x16x64xf32, #tpu.memory_space<vmem>>, vector<1x16x64xf32>
    %cst = arith.constant dense<0.000000e+00> : vector<1x64xf32>
    %1 = vector.multi_reduction <add>, %0, %cst [1] : vector<1x16x64xf32> to vector<1x64xf32>
    %cst_2 = arith.constant 1.600000e+01 : f32
    %2 = vector.broadcast %cst_2 : f32 to vector<1x64xf32>
    %3 = arith.divf %1, %2 : vector<1x64xf32>
    %c0_3 = arith.constant 0 : index
    %c0_4 = arith.constant 0 : index
    %4 = vector.load %arg2[%c0_3, %c0_4] : memref<64x8xbf16, #tpu.memory_space<vmem>>, vector<64x8xbf16>
    %5 = arith.extf %4 : vector<64x8xbf16> to vector<64x8xf32>
    %c0_5 = arith.constant 0 : index
    %c0_6 = arith.constant 0 : index
    %6 = vector.load %arg3[%c0_5, %c0_6] : memref<8x64xbf16, #tpu.memory_space<vmem>>, vector<8x64xbf16>
    %7 = arith.extf %6 : vector<8x64xbf16> to vector<8x64xf32>
    %cst_7 = arith.constant dense<0.000000e+00> : vector<1x8xf32>
    %8 = tpu.matmul %3, %5, %cst_7 {dimension_numbers = #tpu.dot_dimension_numbers<[1], [0], [0], [1], [0, 0, 1, 1], [], []>} : vector<1x64xf32>, vector<64x8xf32>, vector<1x8xf32> -> vector<1x8xf32>
    %cst_8 = arith.constant 0.000000e+00 : f32
    %9 = vector.broadcast %cst_8 : f32 to vector<1x8xf32>
    %10 = arith.maximumf %8, %9 : vector<1x8xf32>
    %cst_9 = arith.constant dense<0.000000e+00> : vector<1x64xf32>
    %11 = tpu.matmul %10, %7, %cst_9 {dimension_numbers = #tpu.dot_dimension_numbers<[1], [0], [0], [1], [0, 0, 1, 1], [], []>} : vector<1x8xf32>, vector<8x64xf32>, vector<1x64xf32> -> vector<1x64xf32>
    %12 = arith.negf %11 : vector<1x64xf32>
    %13 = math.exp %12 : vector<1x64xf32>
    %cst_10 = arith.constant 1.000000e+00 : f32
    %14 = vector.broadcast %cst_10 : f32 to vector<1x64xf32>
    %15 = arith.addf %14, %13 : vector<1x64xf32>
    %16 = arith.divf %14, %15 : vector<1x64xf32>
    %17 = vector.shape_cast %3 : vector<1x64xf32> to vector<1x1x64xf32>
    %18 = vector.broadcast %17 : vector<1x1x64xf32> to vector<1x16x64xf32>
    %19 = arith.subf %0, %18 : vector<1x16x64xf32>
    %20 = arith.mulf %19, %19 : vector<1x16x64xf32>
    %cst_11 = arith.constant dense<0.000000e+00> : vector<1x64xf32>
    %21 = vector.multi_reduction <add>, %20, %cst_11 [1] : vector<1x16x64xf32> to vector<1x64xf32>
    %cst_12 = arith.constant 1.600000e+01 : f32
    %22 = vector.broadcast %cst_12 : f32 to vector<1x64xf32>
    %23 = arith.divf %21, %22 : vector<1x64xf32>
    %24 = arith.mulf %16, %16 : vector<1x64xf32>
    %25 = arith.mulf %24, %23 : vector<1x64xf32>
    %cst_13 = arith.constant 9.99999974E-6 : f32
    %26 = vector.broadcast %cst_13 : f32 to vector<1x64xf32>
    %27 = arith.addf %25, %26 : vector<1x64xf32>
    %28 = math.rsqrt %27 : vector<1x64xf32>
    %29 = arith.mulf %16, %28 : vector<1x64xf32>
    %30 = vector.shape_cast %29 : vector<1x64xf32> to vector<1x1x64xf32>
    %31 = vector.broadcast %30 : vector<1x1x64xf32> to vector<1x16x64xf32>
    %32 = arith.mulf %19, %31 : vector<1x16x64xf32>
    %c0_14 = arith.constant 0 : index
    %c0_15 = arith.constant 0 : index
    %33 = vector.load %arg4[%c0_14, %c0_15] : memref<16x1xf32, #tpu.memory_space<vmem>>, vector<16x1xf32>
    %34 = vector.shape_cast %33 : vector<16x1xf32> to vector<1x16x1xf32>
    %35 = vector.broadcast %34 : vector<1x16x1xf32> to vector<1x16x64xf32>
    %36 = arith.mulf %32, %35 : vector<1x16x64xf32>
    %c0_16 = arith.constant 0 : index
    %c0_17 = arith.constant 0 : index
    %37 = vector.load %arg5[%c0_16, %c0_17] : memref<16x1xf32, #tpu.memory_space<vmem>>, vector<16x1xf32>
    %38 = vector.shape_cast %37 : vector<16x1xf32> to vector<1x16x1xf32>
    %39 = vector.broadcast %38 : vector<1x16x1xf32> to vector<1x16x64xf32>
    %40 = arith.addf %36, %39 : vector<1x16x64xf32>
    %c0_18 = arith.constant 0 : index
    %c0_19 = arith.constant 0 : index
    %c0_20 = arith.constant 0 : index
    %41 = vector.load %arg6[%c0_18, %c0_19, %c0_20] : memref<1x16x64xf32, #tpu.memory_space<vmem>>, vector<1x16x64xf32>
    tpu.vector_store %arg6[%c0_18, %c0_19, %c0_20], %40 {strides = array<i32>} : memref<1x16x64xf32, #tpu.memory_space<vmem>>, vector<1x16x64xf32>,
    return
  }
  func.func @transform_0(%arg0: i32) -> (i32, i32, i32) {
    %c0_i32 = arith.constant 0 : i32
    %c0_i32_0 = arith.constant 0 : i32
    %c0_i32_1 = arith.constant 0 : i32
    return %arg0, %c0_i32, %c0_i32_0 : i32, i32, i32
  }
  func.func @transform_1(%arg0: i32) -> (i32, i32) {
    %c0_i32 = arith.constant 0 : i32
    %c0_i32_0 = arith.constant 0 : i32
    %c0_i32_1 = arith.constant 0 : i32
    return %c0_i32, %c0_i32_0 : i32, i32
  }
  func.func @transform_2(%arg0: i32) -> (i32, i32) {
    %c0_i32 = arith.constant 0 : i32
    %c0_i32_0 = arith.constant 0 : i32
    %c0_i32_1 = arith.constant 0 : i32
    return %c0_i32, %c0_i32_0 : i32, i32
  }
  func.func @transform_3(%arg0: i32) -> (i32, i32) {
    %c0_i32 = arith.constant 0 : i32
    %c0_i32_0 = arith.constant 0 : i32
    %c0_i32_1 = arith.constant 0 : i32
    return %c0_i32, %c0_i32_0 : i32, i32
  }
  func.func @transform_4(%arg0: i32) -> (i32, i32) {
    %c0_i32 = arith.constant 0 : i32
    %c0_i32_0 = arith.constant 0 : i32
    %c0_i32_1 = arith.constant 0 : i32
    return %c0_i32, %c0_i32_0 : i32, i32
  }
  func.func @transform_5(%arg0: i32) -> (i32, i32, i32) {
    %c0_i32 = arith.constant 0 : i32
    %c0_i32_0 = arith.constant 0 : i32
    %c0_i32_1 = arith.constant 0 : i32
    return %arg0, %c0_i32, %c0_i32_0 : i32, i32, i32
  }
}

module attributes {stable_mosaic.version = 11 : i64} {
  func.func @_fpn_level_kernel(%arg0: i32, %arg1: memref<1x16x64xf32, #tpu.memory_space<vmem>>, %arg2: memref<64x8xbf16, #tpu.memory_space<vmem>>, %arg3: memref<8x64xbf16, #tpu.memory_space<vmem>>, %arg4: memref<16x1xf32, #tpu.memory_space<vmem>>, %arg5: memref<16x1xf32, #tpu.memory_space<vmem>>, %arg6: memref<1x16x64xf32, #tpu.memory_space<vmem>>) attributes {dimension_semantics = [#tpu.dimension_semantics<parallel>], iteration_bounds = array<i64: 2>, scalar_prefetch = 0 : i64, scratch_operands = 0 : i64, tpu.core_type = #tpu.core_type<tc>, window_params = [{transform_indices = @transform_0, window_bounds = array<i64: 1, 16, 64>}, {pipeline_mode = #tpu.pipeline_mode<synchronous>, transform_indices = @transform_1, window_bounds = array<i64: 64, 8>}, {pipeline_mode = #tpu.pipeline_mode<synchronous>, transform_indices = @transform_2, window_bounds = array<i64: 8, 64>}, {pipeline_mode = #tpu.pipeline_mode<synchronous>, transform_indices = @transform_3, window_bounds = array<i64: 16, 1>}, {pipeline_mode = #tpu.pipeline_mode<synchronous>, transform_indices = @transform_4, window_bounds = array<i64: 16, 1>}, {transform_indices = @transform_5, window_bounds = array<i64: 1, 16, 64>}]} {
    %c0 = arith.constant 0 : index
    %c0_0 = arith.constant 0 : index
    %c0_1 = arith.constant 0 : index
    %0 = vector.load %arg1[%c0, %c0_0, %c0_1] : memref<1x16x64xf32, #tpu.memory_space<vmem>>, vector<1x16x64xf32>
    %cst = arith.constant dense<0.000000e+00> : vector<1x64xf32>
    %1 = vector.multi_reduction <add>, %0, %cst [1] : vector<1x16x64xf32> to vector<1x64xf32>
    %cst_2 = arith.constant 1.600000e+01 : f32
    %2 = vector.broadcast %cst_2 : f32 to vector<1x64xf32>
    %3 = arith.divf %1, %2 : vector<1x64xf32>
    %c0_3 = arith.constant 0 : index
    %c0_4 = arith.constant 0 : index
    %4 = vector.load %arg2[%c0_3, %c0_4] : memref<64x8xbf16, #tpu.memory_space<vmem>>, vector<64x8xbf16>
    %5 = arith.extf %4 : vector<64x8xbf16> to vector<64x8xf32>
    %c0_5 = arith.constant 0 : index
    %c0_6 = arith.constant 0 : index
    %6 = vector.load %arg3[%c0_5, %c0_6] : memref<8x64xbf16, #tpu.memory_space<vmem>>, vector<8x64xbf16>
    %7 = arith.extf %6 : vector<8x64xbf16> to vector<8x64xf32>
    %cst_7 = arith.constant dense<0.000000e+00> : vector<1x8xf32>
    %8 = tpu.matmul %3, %5, %cst_7 {dimension_numbers = #tpu.dot_dimension_numbers<[1], [0], [0], [1], [0, 0, 1, 1], [], []>} : vector<1x64xf32>, vector<64x8xf32>, vector<1x8xf32> -> vector<1x8xf32>
    %cst_8 = arith.constant 0.000000e+00 : f32
    %9 = vector.broadcast %cst_8 : f32 to vector<1x8xf32>
    %10 = arith.maximumf %8, %9 : vector<1x8xf32>
    %cst_9 = arith.constant dense<0.000000e+00> : vector<1x64xf32>
    %11 = tpu.matmul %10, %7, %cst_9 {dimension_numbers = #tpu.dot_dimension_numbers<[1], [0], [0], [1], [0, 0, 1, 1], [], []>} : vector<1x8xf32>, vector<8x64xf32>, vector<1x64xf32> -> vector<1x64xf32>
    %12 = arith.negf %11 : vector<1x64xf32>
    %13 = math.exp %12 : vector<1x64xf32>
    %cst_10 = arith.constant 1.000000e+00 : f32
    %14 = vector.broadcast %cst_10 : f32 to vector<1x64xf32>
    %15 = arith.addf %14, %13 : vector<1x64xf32>
    %16 = arith.divf %14, %15 : vector<1x64xf32>
    %17 = vector.shape_cast %3 : vector<1x64xf32> to vector<1x1x64xf32>
    %18 = vector.broadcast %17 : vector<1x1x64xf32> to vector<1x16x64xf32>
    %19 = arith.subf %0, %18 : vector<1x16x64xf32>
    %20 = arith.mulf %19, %19 : vector<1x16x64xf32>
    %cst_11 = arith.constant dense<0.000000e+00> : vector<1x64xf32>
    %21 = vector.multi_reduction <add>, %20, %cst_11 [1] : vector<1x16x64xf32> to vector<1x64xf32>
    %cst_12 = arith.constant 1.600000e+01 : f32
    %22 = vector.broadcast %cst_12 : f32 to vector<1x64xf32>
    %23 = arith.divf %21, %22 : vector<1x64xf32>
    %24 = arith.mulf %16, %16 : vector<1x64xf32>
    %25 = arith.mulf %24, %23 : vector<1x64xf32>
    %cst_13 = arith.constant 9.99999974E-6 : f32
    %26 = vector.broadcast %cst_13 : f32 to vector<1x64xf32>
    %27 = arith.addf %25, %26 : vector<1x64xf32>
    %28 = math.rsqrt %27 : vector<1x64xf32>
    %29 = arith.mulf %16, %28 : vector<1x64xf32>
    %30 = vector.shape_cast %29 : vector<1x64xf32> to vector<1x1x64xf32>
    %31 = vector.broadcast %30 : vector<1x1x64xf32> to vector<1x16x64xf32>
    %32 = arith.mulf %19, %31 : vector<1x16x64xf32>
    %c0_14 = arith.constant 0 : index
    %c0_15 = arith.constant 0 : index
    %33 = vector.load %arg4[%c0_14, %c0_15] : memref<16x1xf32, #tpu.memory_space<vmem>>, vector<16x1xf32>
    %34 = vector.shape_cast %33 : vector<16x1xf32> to vector<1x16x1xf32>
    %35 = vector.broadcast %34 : vector<1x16x1xf32> to vector<1x16x64xf32>
    %36 = arith.mulf %32, %35 : vector<1x16x64xf32>
    %c0_16 = arith.constant 0 : index
    %c0_17 = arith.constant 0 : index
    %37 = vector.load %arg5[%c0_16, %c0_17] : memref<16x1xf32, #tpu.memory_space<vmem>>, vector<16x1xf32>
    %38 = vector.shape_cast %37 : vector<16x1xf32> to vector<1x16x1xf32>
    %39 = vector.broadcast %38 : vector<1x16x1xf32> to vector<1x16x64xf32>
    %40 = arith.addf %36, %39 : vector<1x16x64xf32>
    %c0_18 = arith.constant 0 : index
    %c0_19 = arith.constant 0 : index
    %c0_20 = arith.constant 0 : index
    %41 = vector.load %arg6[%c0_18, %c0_19, %c0_20] : memref<1x16x64xf32, #tpu.memory_space<vmem>>, vector<1x16x64xf32>
    tpu.vector_store %arg6[%c0_18, %c0_19, %c0_20], %40 {strides = array<i32>} : memref<1x16x64xf32, #tpu.memory_space<vmem>>, vector<1x16x64xf32>,
    return
  }
  func.func @transform_0(%arg0: i32) -> (i32, i32, i32) {
    %c0_i32 = arith.constant 0 : i32
    %c0_i32_0 = arith.constant 0 : i32
    %c0_i32_1 = arith.constant 0 : i32
    return %arg0, %c0_i32, %c0_i32_0 : i32, i32, i32
  }
  func.func @transform_1(%arg0: i32) -> (i32, i32) {
    %c0_i32 = arith.constant 0 : i32
    %c0_i32_0 = arith.constant 0 : i32
    %c0_i32_1 = arith.constant 0 : i32
    return %c0_i32, %c0_i32_0 : i32, i32
  }
  func.func @transform_2(%arg0: i32) -> (i32, i32) {
    %c0_i32 = arith.constant 0 : i32
    %c0_i32_0 = arith.constant 0 : i32
    %c0_i32_1 = arith.constant 0 : i32
    return %c0_i32, %c0_i32_0 : i32, i32
  }
  func.func @transform_3(%arg0: i32) -> (i32, i32) {
    %c0_i32 = arith.constant 0 : i32
    %c0_i32_0 = arith.constant 0 : i32
    %c0_i32_1 = arith.constant 0 : i32
    return %c0_i32, %c0_i32_0 : i32, i32
  }
  func.func @transform_4(%arg0: i32) -> (i32, i32) {
    %c0_i32 = arith.constant 0 : i32
    %c0_i32_0 = arith.constant 0 : i32
    %c0_i32_1 = arith.constant 0 : i32
    return %c0_i32, %c0_i32_0 : i32, i32
  }
  func.func @transform_5(%arg0: i32) -> (i32, i32, i32) {
    %c0_i32 = arith.constant 0 : i32
    %c0_i32_0 = arith.constant 0 : i32
    %c0_i32_1 = arith.constant 0 : i32
    return %arg0, %c0_i32, %c0_i32_0 : i32, i32, i32
  }
}

</mosaic_0001>

<bundles_post_ra>
// kernel: tpu_custom_call.1
= control target key start
LH: loop header
LB: loop body
LE: loop exit
PB: predicated region body
PF: predicated region fallthrough
CT: control target
= control target key end

     0   :  { %10 = vsyncpa [#allocation3], 0  ;;  %s914_s0 = inlined_call_operand.vmem [shape: f32[2,16,64], index: 0, kind: input, shape index: {}]   ;;  %s915_s1 = inlined_call_operand.vmem [shape: bf16[64,8], index: 1, kind: input, shape index: {}]   ;;  %s916_s2 = inlined_call_operand.vmem [shape: bf16[8,64], index: 2, kind: input, shape index: {}]   ;;  %s917_s3 = inlined_call_operand.vmem [shape: f32[16,1], index: 3, kind: input, shape index: {}]   ;;  %s918_s4 = inlined_call_operand.vmem [shape: f32[16,1], index: 4, kind: input, shape index: {}]   ;;  %s919_s5 = inlined_call_operand.hbm [shape: f32[2,16,64], index: 5, kind: output, shape index: {}]  }
   0x1   :  { %12 = vsyncpa [#allocation3 + $0x1], 0  ;;  %s777_s18 = smov 0   ;;  %s779_s19 = smov 0  }
   0x2   :  { %s781_s20 = smov 0   ;;  %s783_s21 = smov 0  }
   0x3 LB: > { %s798_s22 = sadd.s32 4294967295, %s738_s21   ;;  %s540_s23 = sadd.s32 4294967294, %s738_s21   ;;  %s738_s21 = sphi %s783_s21, %s925_s21   ;;  %s734_s20 = sphi %s781_s20, %s924_s20   ;;  %s730_s19 = sphi %s779_s19, %s923_s19   ;;  %s726_s18 = sphi %s777_s18, %s922_s18  }
   0x4   : > { %s802_s24 = sadd.s32 1, %s738_s21   ;;  %s135_s25 = sadd.s32 1, %s734_s20 }
   0x5   : > { %s132_s26 = ssub.s32 %s738_s21, %s802_s24  ;;  %p145_p0 = scmp.ne.s32.totalorder %s734_s20, %s730_s19 }
   0x6   : > { %p133_p1 = scmp.eq.s32.totalorder %s132_s26, 0  ;;  %p146_p2 = scmp.eq.s32.totalorder %s798_s22, 1 }
   0x7   : > { %p151_p3 = scmp.ne.s32.totalorder %s730_s19, %s726_s18  ;;  %p152_p4 = scmp.eq.s32.totalorder %s540_s23, 1 }
   0x8   : > { %s813_s27 = scalar_select %p133_p1, %s734_s20, %s135_s25  }
   0x9   : > { %p815_p5 = por %p146_p2, %p145_p0  ;;  %p819_p6 = por %p152_p4, %p151_p3 }
   0xa   : > { %p543_p7 = scmp.ge.s32.totalorder %s738_s21, 1  ;;  %p190_p8 = scmp.lt.s32.totalorder %s738_s21, 3 }
   0xc   : > { %p191_p9 = pnand %p543_p7, %p190_p8 }
   0xd   : > { %v558_v0 = vld [vmem:[%s915_s1] sm:$0xff] (!%p191_p9)   ;;  %v740_v1 = vmov (!%p191_p9), 0.0|0.0   ;;  %vm741_vm0 = vmmov (!%p191_p9), 0   ;;  %v742_v2 = vmov (!%p191_p9), 0.0   ;;  %p218_p10 = scmp.lt.s32.totalorder (!%p191_p9), %s798_s22, 1  ;;  %v573_v3 = vld [vmem:[%s915_s1 + $0x8] sm:$0xff] (!%p191_p9)   ;;  %v428_v51 = vlaneseq (!%p191_p9) }
   0xe   : > { %194 = sbr.rel (%p191_p9) target bundleno = 537 (0x219), region = 40  ;;  %611 = vmatprep.subr.bf16.mxu0 (!%p191_p9), %v740_v1  ;;  %603 = vmatprep.mubr.msk.f32.mxu0 (!%p191_p9), %vm741_vm0, %v742_v2  ;;  %vm225_vm1 = vcmask (!%p191_p9), 523264   ;;  %v574_v4 = vld [vmem:[%s915_s1 + $0x10] sm:$0xff] (!%p191_p9)   ;;  %v575_v10 = vld [vmem:[%s915_s1 + $0x18] sm:$0xff] (!%p191_p9)   ;;  %v253_v18 = vld [vmem:[%s916_s2] sm:$0xf] (!%p191_p9) }
   0xf   : > { %613 = vmatpush3.bf16.msra.mxu0 (!%p191_p9), %v558_v0  ;;  %606 = vmatprep.subr.mxu1 (!%p191_p9), %v742_v2  ;;  %v254_v19 = vunpack.c.l.bf16 (!%p191_p9), %v253_v18  ;;  %v434_v20 = vld [vmem:[%s917_s3] sm:$0xff] (!%p191_p9)  ;;  %v743_v22 = vmov (!%p191_p9), 0   ;;  %v435_v23 = vld [vmem:[%s917_s3 + $0x8] sm:$0xff] (!%p191_p9)  ;;  %vm329_vm2 = vcmask (!%p191_p9), 64512   ;;  %v429_v52 = vshrl.u32 (!%p191_p9), %v428_v51, 7  ;;  %s215_s12 = sand.u32 (!%p191_p9), 1, %s730_s19  }
  0x10   : > { %614 = vmatprep.subr.bf16.mxu0 (!%p191_p9), %v740_v1  ;;  %608 = vmatprep.mubr.msk.f32.mxu1 (!%p191_p9), %vm741_vm0, %v742_v2  ;;  %v448_v21 = vld [vmem:[%s918_s4] sm:$0xff] (!%p191_p9)  ;;  %v449_v24 = vld [vmem:[%s918_s4 + $0x8] sm:$0xff] (!%p191_p9)  ;;  %s556_s16 = sshll.u32 (!%p191_p9), %s798_s22, 8  ;;  %s744_s30 = smov (!%p191_p9), [#allocation2]  }
  0x11   : > { %607 = vmatpush3.msra.mxu1 (!%p191_p9), %v254_v19  ;;  %668 = vset.pattern.permute.xlu0 (!%p191_p9), %v743_v22  ;;  %v430_v53 = vsub.s32 (!%p191_p9), 0, %v429_v52  ;;  %s869_s25 = scalar_lea.hbm (!%p191_p9), %s919_s5, %s556_s16  ;;  %s680_s6 = sshll.u32 (!%p191_p9), %s744_s30, 4  ;;  %s681_s6 = int_to_ptr.vmem [resolvable:$false] %s680_s6 }
  0x12   : > { %669 = vset.pattern.permute.xlu1 (!%p191_p9), %v743_v22  ;;  %438 = vperm.xlu0 (!%p191_p9), %668, %v434_v20   ;;  %s682_s7 = scalar_lea.vmem (!%p191_p9), %s681_s6, 512 }
  0x13   : > { %616 = vmatpush3.bf16.msra.mxu0 (!%p191_p9), %v573_v3  ;;  %452 = vperm.xlu1 (!%p191_p9), %669, %v448_v21  }
  0x14   : > { %617 = vmatprep.subr.bf16.mxu0 (!%p191_p9), %v740_v1 }
  0x15   : > { %s219_s9 = scalar_select %p218_p10, %s798_s22, 1 }
  0x16   : > { %443 = vperm.xlu0 %668, %v435_v23   ;;  %s873_s22 = scalar_lea.sflag [#allocation3], %s215_s12 }
  0x17   : > { %s555_s10 = sshll.u32 %s219_s9, 4  ;;  %619 = vmatpush3.bf16.msra.mxu0 %v574_v4  ;;  %457 = vperm.xlu1 %669, %v449_v24  }
  0x18   : > { %s222_s13 = scalar_lea.vmem %s914_s0, %s555_s10  ;;  %620 = vmatprep.subr.bf16.mxu0 %v740_v1 }
  0x19   : > { %v223_v5 = vld [vmem:[%s222_s13] sm:$0xff]  ;;  %v224_v6 = vld [vmem:[%s222_s13 + $0x8] sm:$0xff]  ;;  %s544_s13 = sshll.u32 %s215_s12, 4 }
  0x1a   : > { %v226_v7 = vsel %vm225_vm1, %v223_v5, 0.0  ;;  %v227_v8 = vsel %vm225_vm1, %v224_v6, 0.0  ;;  %s217_s14 = scalar_lea.vmem [#allocation2], %s544_s13 }
  0x1b   : > { %v228_v9 = vadd.f32 %v227_v8, %v226_v7  ;;  %622 = vmatpush3.bf16.msra.mxu0 %v575_v10  ;;  %s478_s15 = sshll.u32 %s217_s14, 4  ;;  %s864_s15 = int_to_ptr.vmem [resolvable:$true] %s478_s15 }
  0x1c   : > { %s676_s26 = scalar_lea.vmem %s864_s15, 256  ;;  %p683_p0 = scmp.lt.s32.totalorder %s864_s15, %s681_s6 }
  0x1d   : > { %v229_v11 = vrot.slane %v228_v9, 4  ;;  %p677_p11 = scmp.ne.s32.totalorder %s864_s15, %s676_s26  ;;  %p684_p1 = scmp.lt.s32.totalorder %s682_s7, %s676_s26 }
  0x1f   : > { %v230_v12 = vadd.f32 %v229_v11, %v228_v9  ;;  %p678_p12 = pnand %p677_p11, %p815_p5  ;;  %p685_p2 = por %p684_p1, %p683_p0 }
  0x21   : > { %v231_v13 = vrot.slane %v230_v12, 2  ;;  %p679_p13 = pneg %p678_p12 }
  0x23   : > { %v232_v14 = vadd.f32 %v231_v13, %v230_v12  ;;  %p686_p3 = pnand %p685_p2, %p679_p13 }
  0x25   : > { %v233_v15 = vrot.slane %v232_v14, 1 }
  0x27   : > { %v234_v16 = vadd.f32 %v233_v15, %v232_v14 }
  0x29   : > { %v236_v17 = vmul.f32 0.0625, %v234_v16 }
  0x2b   : > { %604 = vmatmul.mubr.msk.f32.vlgmr.msra.gmra.mrb[0].mxu0 %vm225_vm1, %v236_v17  ;;  %v409_v28 = vsub.f32 %v223_v5, %v236_v17  ;;  %v410_v29 = vsub.f32 %v224_v6, %v236_v17 }
  0x2d   : > { %v411_v30 = vmul.f32 %v409_v28, %v409_v28  ;;  %v412_v31 = vmul.f32 %v410_v29, %v410_v29 }
  0x2f   : > { %v413_v32 = vsel %vm225_vm1, %v411_v30, 0.0  ;;  %v414_v33 = vsel %vm225_vm1, %v412_v31, 0.0 }
  0x30   : > { %v415_v34 = vadd.f32 %v414_v33, %v413_v32 }
  0x32   : > { %v416_v38 = vrot.slane %v415_v34, 4 }
  0x34   : > { %v417_v39 = vadd.f32 %v416_v38, %v415_v34 }
  0x36   : > { %v418_v40 = vrot.slane %v417_v39, 2 }
  0x38   : > { %v419_v42 = vadd.f32 %v418_v40, %v417_v39 }
  0x3a   : > { %v420_v44 = vrot.slane %v419_v42, 1 }
  0x3c   : > { %v421_v45 = vadd.f32 %v420_v44, %v419_v42 }
  0x3e   : > { %v422_v46 = vmul.f32 0.0625, %v421_v45 }
  0x91   : > { %v439_v55 = vpop.permute.xlu0 %438 }
  0x92   : > { %v453_v57 = vpop.permute.xlu1 %452 }
  0x95   : > { %v444_v61 = vpop.permute.xlu0 %443 }
  0x96   : > { %v458_v0 = vpop.permute.xlu1 %457 }
  0xfe   : > { %v324_v25 = vpop.f32.mrb[0].mxu0 }
  0xff   : > { %v328_v26 = vmax.f32 %v324_v25, 0.0  ;;  %v605_v27 = vpop.f32.mrb[1].mxu0 }
 0x101   : > { %609 = vmatmul.mubr.msk.f32.vlgmr.msra.gmra.mrb[0].mxu1 %vm329_vm2, %v328_v26 }
 0x1d4   : > { %v399_v35 = vpop.f32.mrb[0].mxu1 }
 0x1d5   : > { %v549_v36 = vmul.f32 -1.442695, %v399_v35  ;;  %v610_v37 = vpop.f32.mrb[1].mxu1 }
 0x1d7   : > { %670 = vpow2.f32 %v549_v36 }
 0x1e1   : > { %v671_v41 = vpop.eup %670 }
 0x1e2   : > { %v406_v43 = vadd.f32 1.0, %v671_v41 }
 0x1e4   : > { %672 = vrcp.f32 %v406_v43 }
 0x1ee   : > { %v673_v47 = vpop.eup %672 }
 0x1ef   : > { %v423_v48 = vmul.f32 %v673_v47, %v673_v47 }
 0x1f1   : > { %v424_v49 = vmul.f32 %v423_v48, %v422_v46 }
 0x1f3   : > { %v425_v50 = vadd.f32 1e-05, %v424_v49 }
 0x1f5   : > { %674 = vrsqrt.f32 %v425_v50 }
 0x1ff   : > { %v675_v54 = vpop.eup %674 }
 0x200   : > { %v427_v56 = vmul.f32 %v675_v54, %v673_v47 }
 0x202   : > { %v431_v58 = vrot.slane %v427_v56, %v430_v53 }
 0x204   : > { %v432_v59 = vmul.f32 %v431_v58, %v409_v28  ;;  %v433_v60 = vmul.f32 %v431_v58, %v410_v29 }
 0x206   : > { %v446_v62 = vmul.f32 %v439_v55, %v432_v59  ;;  %v447_v63 = vmul.f32 %v444_v61, %v433_v60 }
 0x208   : > { %v460_v1 = vadd.f32 %v453_v57, %v446_v62  ;;  %v461_v2 = vadd.f32 %v458_v0, %v447_v63 }
 0x20a   : > { %462 = vst.msk [vmem:[%s217_s14] sm:$0xff] %vm225_vm1, %v460_v1  ;;  %463 = vst.msk [vmem:[%s217_s14 + $0x8] sm:$0xff] %vm225_vm1, %v461_v2 }
 0x20b   : > { %689 = shalt.err (!%p686_p3)
}
 0x20c   : > { %s690_s8 = scalar_lea.hbm %s869_s25, 256  ;;  %s694_s11 = scalar_lea.hbm %s919_s5, 512 }
 0x20d   : > { %p691_p4 = scmp.ne.s32.totalorder %s869_s25, %s690_s8  ;;  %p695_p9 = scmp.lt.u32.totalorder %s869_s25, %s919_s5 }
 0x20e   : > { %p696_p10 = scmp.lt.u32.totalorder %s694_s11, %s690_s8  ;;  %p698_p12 = scmp.lt.u32.totalorder %s690_s8, %s869_s25 }
 0x20f   : > { %p692_p7 = pnand %p691_p4, %p815_p5 }
 0x210   : > { %p697_p11 = por %p696_p10, %p695_p9 }
 0x211   : > { %p693_p8 = pneg %p692_p7 }
 0x212   : > { %p699_p13 = por %p698_p12, %p697_p11 }
 0x214   : > { %p700_p0 = pnand %p699_p13, %p693_p8 }
 0x216   : > { %703 = shalt.err (!%p700_p0)
}
 0x217   : > { %s745_s14 = smov 128   ;;  %s746_s16 = smov 8  }
 0x218   : > { %623 = dma.vmem_to_hbm [thread:$0]  (%p815_p5), %s864_s15, 256, %s869_s25, %s873_s22, %s745_s14, %s745_s14, %s746_s16  }
 0x219 PF: > { %p629_p1 = scmp.ge.s32.totalorder %s738_s21, 2  ;;  %s493_s17 = sand.u32 1, %s726_s18  }
 0x21a   : > { %s494_s23 = scalar_lea.sflag [#allocation3], %s493_s17 }
 0x21b   : > { %p626_p2 = pnand %p629_p1, %p819_p6 }
 0x21d   : > { %721 = dma.done.wait (!%p626_p2), %s494_s23, 256  }
 0x21e   : > { %723 = vsyncadd (!%p626_p2), %s494_s23, 4294967040  ;;  %p15_p3 = scmp.ge.s32.totalorder %s802_s24, 4   ;;  %s922_s18 = smov %s730_s19 }
 0x21f   : > { %s923_s19 = smov %s734_s20  ;;  %s924_s20 = smov %s813_s27 }
 0x220   : > { %s925_s21 = smov %s802_s24  ;;  %17 = sbr.rel (!%p15_p3) target bundleno = 3 (0x3), region = 75 }
 0x227   :  { %499 = vsyncpa [#allocation3], 1 }
 0x228   :  { %501 = vsyncpa [#allocation3 + $0x1], 1 }

// kernel: tpu_custom_call.1
= control target key start
LH: loop header
LB: loop body
LE: loop exit
PB: predicated region body
PF: predicated region fallthrough
CT: control target
= control target key end

     0   :  { %10 = vsyncpa [#allocation3], 0  ;;  %s914_s0 = inlined_call_operand.vmem [shape: f32[2,16,64], index: 0, kind: input, shape index: {}]   ;;  %s915_s1 = inlined_call_operand.vmem [shape: bf16[64,8], index: 1, kind: input, shape index: {}]   ;;  %s916_s2 = inlined_call_operand.vmem [shape: bf16[8,64], index: 2, kind: input, shape index: {}]   ;;  %s917_s3 = inlined_call_operand.vmem [shape: f32[16,1], index: 3, kind: input, shape index: {}]   ;;  %s918_s4 = inlined_call_operand.vmem [shape: f32[16,1], index: 4, kind: input, shape index: {}]   ;;  %s919_s5 = inlined_call_operand.hbm [shape: f32[2,16,64], index: 5, kind: output, shape index: {}]  }
   0x1   :  { %12 = vsyncpa [#allocation3 + $0x1], 0  ;;  %s777_s18 = smov 0   ;;  %s779_s19 = smov 0  }
   0x2   :  { %s781_s20 = smov 0   ;;  %s783_s21 = smov 0  }
   0x3 LB: > { %s798_s22 = sadd.s32 4294967295, %s738_s21   ;;  %s540_s23 = sadd.s32 4294967294, %s738_s21   ;;  %s738_s21 = sphi %s783_s21, %s925_s21   ;;  %s734_s20 = sphi %s781_s20, %s924_s20   ;;  %s730_s19 = sphi %s779_s19, %s923_s19   ;;  %s726_s18 = sphi %s777_s18, %s922_s18  }
   0x4   : > { %s802_s24 = sadd.s32 1, %s738_s21   ;;  %s135_s25 = sadd.s32 1, %s734_s20 }
   0x5   : > { %s132_s26 = ssub.s32 %s738_s21, %s802_s24  ;;  %p145_p0 = scmp.ne.s32.totalorder %s734_s20, %s730_s19 }
   0x6   : > { %p133_p1 = scmp.eq.s32.totalorder %s132_s26, 0  ;;  %p146_p2 = scmp.eq.s32.totalorder %s798_s22, 1 }
   0x7   : > { %p151_p3 = scmp.ne.s32.totalorder %s730_s19, %s726_s18  ;;  %p152_p4 = scmp.eq.s32.totalorder %s540_s23, 1 }
   0x8   : > { %s813_s27 = scalar_select %p133_p1, %s734_s20, %s135_s25  }
   0x9   : > { %p815_p5 = por %p146_p2, %p145_p0  ;;  %p819_p6 = por %p152_p4, %p151_p3 }
   0xa   : > { %p543_p7 = scmp.ge.s32.totalorder %s738_s21, 1  ;;  %p190_p8 = scmp.lt.s32.totalorder %s738_s21, 3 }
   0xc   : > { %p191_p9 = pnand %p543_p7, %p190_p8 }
   0xd   : > { %v558_v0 = vld [vmem:[%s915_s1] sm:$0xff] (!%p191_p9)   ;;  %v740_v1 = vmov (!%p191_p9), 0.0|0.0   ;;  %vm741_vm0 = vmmov (!%p191_p9), 0   ;;  %v742_v2 = vmov (!%p191_p9), 0.0   ;;  %p218_p10 = scmp.lt.s32.totalorder (!%p191_p9), %s798_s22, 1  ;;  %v573_v3 = vld [vmem:[%s915_s1 + $0x8] sm:$0xff] (!%p191_p9)   ;;  %v428_v51 = vlaneseq (!%p191_p9) }
   0xe   : > { %194 = sbr.rel (%p191_p9) target bundleno = 537 (0x219), region = 40  ;;  %611 = vmatprep.subr.bf16.mxu0 (!%p191_p9), %v740_v1  ;;  %603 = vmatprep.mubr.msk.f32.mxu0 (!%p191_p9), %vm741_vm0, %v742_v2  ;;  %vm225_vm1 = vcmask (!%p191_p9), 523264   ;;  %v574_v4 = vld [vmem:[%s915_s1 + $0x10] sm:$0xff] (!%p191_p9)   ;;  %v575_v10 = vld [vmem:[%s915_s1 + $0x18] sm:$0xff] (!%p191_p9)   ;;  %v253_v18 = vld [vmem:[%s916_s2] sm:$0xf] (!%p191_p9) }
   0xf   : > { %613 = vmatpush3.bf16.msra.mxu0 (!%p191_p9), %v558_v0  ;;  %606 = vmatprep.subr.mxu1 (!%p191_p9), %v742_v2  ;;  %v254_v19 = vunpack.c.l.bf16 (!%p191_p9), %v253_v18  ;;  %v434_v20 = vld [vmem:[%s917_s3] sm:$0xff] (!%p191_p9)  ;;  %v743_v22 = vmov (!%p191_p9), 0   ;;  %v435_v23 = vld [vmem:[%s917_s3 + $0x8] sm:$0xff] (!%p191_p9)  ;;  %vm329_vm2 = vcmask (!%p191_p9), 64512   ;;  %v429_v52 = vshrl.u32 (!%p191_p9), %v428_v51, 7  ;;  %s215_s12 = sand.u32 (!%p191_p9), 1, %s730_s19  }
  0x10   : > { %614 = vmatprep.subr.bf16.mxu0 (!%p191_p9), %v740_v1  ;;  %608 = vmatprep.mubr.msk.f32.mxu1 (!%p191_p9), %vm741_vm0, %v742_v2  ;;  %v448_v21 = vld [vmem:[%s918_s4] sm:$0xff] (!%p191_p9)  ;;  %v449_v24 = vld [vmem:[%s918_s4 + $0x8] sm:$0xff] (!%p191_p9)  ;;  %s556_s16 = sshll.u32 (!%p191_p9), %s798_s22, 8  ;;  %s744_s30 = smov (!%p191_p9), [#allocation2]  }
  0x11   : > { %607 = vmatpush3.msra.mxu1 (!%p191_p9), %v254_v19  ;;  %668 = vset.pattern.permute.xlu0 (!%p191_p9), %v743_v22  ;;  %v430_v53 = vsub.s32 (!%p191_p9), 0, %v429_v52  ;;  %s869_s25 = scalar_lea.hbm (!%p191_p9), %s919_s5, %s556_s16  ;;  %s680_s6 = sshll.u32 (!%p191_p9), %s744_s30, 4  ;;  %s681_s6 = int_to_ptr.vmem [resolvable:$false] %s680_s6 }
  0x12   : > { %669 = vset.pattern.permute.xlu1 (!%p191_p9), %v743_v22  ;;  %438 = vperm.xlu0 (!%p191_p9), %668, %v434_v20   ;;  %s682_s7 = scalar_lea.vmem (!%p191_p9), %s681_s6, 512 }
  0x13   : > { %616 = vmatpush3.bf16.msra.mxu0 (!%p191_p9), %v573_v3  ;;  %452 = vperm.xlu1 (!%p191_p9), %669, %v448_v21  }
  0x14   : > { %617 = vmatprep.subr.bf16.mxu0 (!%p191_p9), %v740_v1 }
  0x15   : > { %s219_s9 = scalar_select %p218_p10, %s798_s22, 1 }
  0x16   : > { %443 = vperm.xlu0 %668, %v435_v23   ;;  %s873_s22 = scalar_lea.sflag [#allocation3], %s215_s12 }
  0x17   : > { %s555_s10 = sshll.u32 %s219_s9, 4  ;;  %619 = vmatpush3.bf16.msra.mxu0 %v574_v4  ;;  %457 = vperm.xlu1 %669, %v449_v24  }
  0x18   : > { %s222_s13 = scalar_lea.vmem %s914_s0, %s555_s10  ;;  %620 = vmatprep.subr.bf16.mxu0 %v740_v1 }
  0x19   : > { %v223_v5 = vld [vmem:[%s222_s13] sm:$0xff]  ;;  %v224_v6 = vld [vmem:[%s222_s13 + $0x8] sm:$0xff]  ;;  %s544_s13 = sshll.u32 %s215_s12, 4 }
  0x1a   : > { %v226_v7 = vsel %vm225_vm1, %v223_v5, 0.0  ;;  %v227_v8 = vsel %vm225_vm1, %v224_v6, 0.0  ;;  %s217_s14 = scalar_lea.vmem [#allocation2], %s544_s13 }
  0x1b   : > { %v228_v9 = vadd.f32 %v227_v8, %v226_v7  ;;  %622 = vmatpush3.bf16.msra.mxu0 %v575_v10  ;;  %s478_s15 = sshll.u32 %s217_s14, 4  ;;  %s864_s15 = int_to_ptr.vmem [resolvable:$true] %s478_s15 }
  0x1c   : > { %s676_s26 = scalar_lea.vmem %s864_s15, 256  ;;  %p683_p0 = scmp.lt.s32.totalorder %s864_s15, %s681_s6 }
  0x1d   : > { %v229_v11 = vrot.slane %v228_v9, 4  ;;  %p677_p11 = scmp.ne.s32.totalorder %s864_s15, %s676_s26  ;;  %p684_p1 = scmp.lt.s32.totalorder %s682_s7, %s676_s26 }
  0x1f   : > { %v230_v12 = vadd.f32 %v229_v11, %v228_v9  ;;  %p678_p12 = pnand %p677_p11, %p815_p5  ;;  %p685_p2 = por %p684_p1, %p683_p0 }
  0x21   : > { %v231_v13 = vrot.slane %v230_v12, 2  ;;  %p679_p13 = pneg %p678_p12 }
  0x23   : > { %v232_v14 = vadd.f32 %v231_v13, %v230_v12  ;;  %p686_p3 = pnand %p685_p2, %p679_p13 }
  0x25   : > { %v233_v15 = vrot.slane %v232_v14, 1 }
  0x27   : > { %v234_v16 = vadd.f32 %v233_v15, %v232_v14 }
  0x29   : > { %v236_v17 = vmul.f32 0.0625, %v234_v16 }
  0x2b   : > { %604 = vmatmul.mubr.msk.f32.vlgmr.msra.gmra.mrb[0].mxu0 %vm225_vm1, %v236_v17  ;;  %v409_v28 = vsub.f32 %v223_v5, %v236_v17  ;;  %v410_v29 = vsub.f32 %v224_v6, %v236_v17 }
  0x2d   : > { %v411_v30 = vmul.f32 %v409_v28, %v409_v28  ;;  %v412_v31 = vmul.f32 %v410_v29, %v410_v29 }
  0x2f   : > { %v413_v32 = vsel %vm225_vm1, %v411_v30, 0.0  ;;  %v414_v33 = vsel %vm225_vm1, %v412_v31, 0.0 }
  0x30   : > { %v415_v34 = vadd.f32 %v414_v33, %v413_v32 }
  0x32   : > { %v416_v38 = vrot.slane %v415_v34, 4 }
  0x34   : > { %v417_v39 = vadd.f32 %v416_v38, %v415_v34 }
  0x36   : > { %v418_v40 = vrot.slane %v417_v39, 2 }
  0x38   : > { %v419_v42 = vadd.f32 %v418_v40, %v417_v39 }
  0x3a   : > { %v420_v44 = vrot.slane %v419_v42, 1 }
  0x3c   : > { %v421_v45 = vadd.f32 %v420_v44, %v419_v42 }
  0x3e   : > { %v422_v46 = vmul.f32 0.0625, %v421_v45 }
  0x91   : > { %v439_v55 = vpop.permute.xlu0 %438 }
  0x92   : > { %v453_v57 = vpop.permute.xlu1 %452 }
  0x95   : > { %v444_v61 = vpop.permute.xlu0 %443 }
  0x96   : > { %v458_v0 = vpop.permute.xlu1 %457 }
  0xfe   : > { %v324_v25 = vpop.f32.mrb[0].mxu0 }
  0xff   : > { %v328_v26 = vmax.f32 %v324_v25, 0.0  ;;  %v605_v27 = vpop.f32.mrb[1].mxu0 }
 0x101   : > { %609 = vmatmul.mubr.msk.f32.vlgmr.msra.gmra.mrb[0].mxu1 %vm329_vm2, %v328_v26 }
 0x1d4   : > { %v399_v35 = vpop.f32.mrb[0].mxu1 }
 0x1d5   : > { %v549_v36 = vmul.f32 -1.442695, %v399_v35  ;;  %v610_v37 = vpop.f32.mrb[1].mxu1 }
 0x1d7   : > { %670 = vpow2.f32 %v549_v36 }
 0x1e1   : > { %v671_v41 = vpop.eup %670 }
 0x1e2   : > { %v406_v43 = vadd.f32 1.0, %v671_v41 }
 0x1e4   : > { %672 = vrcp.f32 %v406_v43 }
 0x1ee   : > { %v673_v47 = vpop.eup %672 }
 0x1ef   : > { %v423_v48 = vmul.f32 %v673_v47, %v673_v47 }
 0x1f1   : > { %v424_v49 = vmul.f32 %v423_v48, %v422_v46 }
 0x1f3   : > { %v425_v50 = vadd.f32 1e-05, %v424_v49 }
 0x1f5   : > { %674 = vrsqrt.f32 %v425_v50 }
 0x1ff   : > { %v675_v54 = vpop.eup %674 }
 0x200   : > { %v427_v56 = vmul.f32 %v675_v54, %v673_v47 }
 0x202   : > { %v431_v58 = vrot.slane %v427_v56, %v430_v53 }
 0x204   : > { %v432_v59 = vmul.f32 %v431_v58, %v409_v28  ;;  %v433_v60 = vmul.f32 %v431_v58, %v410_v29 }
 0x206   : > { %v446_v62 = vmul.f32 %v439_v55, %v432_v59  ;;  %v447_v63 = vmul.f32 %v444_v61, %v433_v60 }
 0x208   : > { %v460_v1 = vadd.f32 %v453_v57, %v446_v62  ;;  %v461_v2 = vadd.f32 %v458_v0, %v447_v63 }
 0x20a   : > { %462 = vst.msk [vmem:[%s217_s14] sm:$0xff] %vm225_vm1, %v460_v1  ;;  %463 = vst.msk [vmem:[%s217_s14 + $0x8] sm:$0xff] %vm225_vm1, %v461_v2 }
 0x20b   : > { %689 = shalt.err (!%p686_p3)
}
 0x20c   : > { %s690_s8 = scalar_lea.hbm %s869_s25, 256  ;;  %s694_s11 = scalar_lea.hbm %s919_s5, 512 }
 0x20d   : > { %p691_p4 = scmp.ne.s32.totalorder %s869_s25, %s690_s8  ;;  %p695_p9 = scmp.lt.u32.totalorder %s869_s25, %s919_s5 }
 0x20e   : > { %p696_p10 = scmp.lt.u32.totalorder %s694_s11, %s690_s8  ;;  %p698_p12 = scmp.lt.u32.totalorder %s690_s8, %s869_s25 }
 0x20f   : > { %p692_p7 = pnand %p691_p4, %p815_p5 }
 0x210   : > { %p697_p11 = por %p696_p10, %p695_p9 }
 0x211   : > { %p693_p8 = pneg %p692_p7 }
 0x212   : > { %p699_p13 = por %p698_p12, %p697_p11 }
 0x214   : > { %p700_p0 = pnand %p699_p13, %p693_p8 }
 0x216   : > { %703 = shalt.err (!%p700_p0)
}
 0x217   : > { %s745_s14 = smov 128   ;;  %s746_s16 = smov 8  }
 0x218   : > { %623 = dma.vmem_to_hbm [thread:$0]  (%p815_p5), %s864_s15, 256, %s869_s25, %s873_s22, %s745_s14, %s745_s14, %s746_s16  }
 0x219 PF: > { %p629_p1 = scmp.ge.s32.totalorder %s738_s21, 2  ;;  %s493_s17 = sand.u32 1, %s726_s18  }
 0x21a   : > { %s494_s23 = scalar_lea.sflag [#allocation3], %s493_s17 }
 0x21b   : > { %p626_p2 = pnand %p629_p1, %p819_p6 }
 0x21d   : > { %721 = dma.done.wait (!%p626_p2), %s494_s23, 256  }
 0x21e   : > { %723 = vsyncadd (!%p626_p2), %s494_s23, 4294967040  ;;  %p15_p3 = scmp.ge.s32.totalorder %s802_s24, 4   ;;  %s922_s18 = smov %s730_s19 }
 0x21f   : > { %s923_s19 = smov %s734_s20  ;;  %s924_s20 = smov %s813_s27 }
 0x220   : > { %s925_s21 = smov %s802_s24  ;;  %17 = sbr.rel (!%p15_p3) target bundleno = 3 (0x3), region = 75 }
 0x227   :  { %499 = vsyncpa [#allocation3], 1 }
 0x228   :  { %501 = vsyncpa [#allocation3 + $0x1], 1 }

</bundles_post_ra>
